<compile_context>
chip_gen: v5e
topology: v5e:2x2
jax: 0.10.0
libtpu: 0.0.40
codegen_flags: <defaults>
</compile_context>

<pallas_src>
import functools

import numpy as np
import jax
import jax.numpy as jnp
from jax.experimental import pallas as pl
from jax.experimental.pallas import tpu as pltpu


# ----------------------------------------------------------------------------
# Kernels
# ----------------------------------------------------------------------------

def _stats_kernel(x_ref, g_ref, s_ref, *, n_inner, s_total, s_blk, need_mask):
    # x_ref: (1, 4Cq, S_blk)
    # g_ref: (1, 1, 4Cq, 4Cq)  accumulator of sum x x^T   (per (b, outer))
    # s_ref: (1, 1, 4Cq, 1)    accumulator of sum x
    si = pl.program_id(2)

    @pl.when(si == 0)
    def _():
        g_ref[...] = jnp.zeros_like(g_ref)
        s_ref[...] = jnp.zeros_like(s_ref)

    x = x_ref[0]                                          # (4Cq, S_blk)
    if need_mask:
        # Tail tile: zero out lanes past the true spatial extent.
        t = pl.program_id(1) * n_inner + si               # global spatial tile
        lane = jax.lax.broadcasted_iota(jnp.int32, x.shape, 1)
        x = jnp.where(lane < (s_total - t * s_blk), x, jnp.zeros_like(x))

    # Second moments on the MXU: G += X @ X^T (contract over the lane axis).
    g_ref[0, 0] += jax.lax.dot_general(
        x, x, (((1,), (1,)), ((), ())), preferred_element_type=jnp.float32)
    # First moments: one cross-lane (XLU) reduce per tile.
    s_ref[0, 0] += jnp.sum(x.astype(jnp.float32), axis=1, keepdims=True)


def _apply_kernel(x_ref, a_ref, b_ref, o_ref):
    # x_ref: (1, 4Cq, S_blk)   a_ref: (4Cq, 4Cq) block-diag fused whiten+affine
    # b_ref: (4Cq, 1)          o_ref: (1, 4Cq, S_blk)
    y = jnp.dot(a_ref[...], x_ref[0], preferred_element_type=jnp.float32)
    o_ref[0] = (y + b_ref[...]).astype(o_ref.dtype)


# ----------------------------------------------------------------------------
# Small per-channel 4x4 linear algebra (plain JAX, vectorized over channels)
# ----------------------------------------------------------------------------

def _chol4(A):
    """Cholesky of (Q,4,4) SPD matrices, closed form."""
    a = lambda i, j: A[:, i, j]
    L00 = jnp.sqrt(a(0, 0))
    L10 = a(1, 0) / L00
    L11 = jnp.sqrt(a(1, 1) - L10 * L10)
    L20 = a(2, 0) / L00
    L21 = (a(2, 1) - L20 * L10) / L11
    L22 = jnp.sqrt(a(2, 2) - L20 * L20 - L21 * L21)
    L30 = a(3, 0) / L00
    L31 = (a(3, 1) - L30 * L10) / L11
    L32 = (a(3, 2) - L30 * L20 - L31 * L21) / L22
    L33 = jnp.sqrt(a(3, 3) - L30 * L30 - L31 * L31 - L32 * L32)
    z = jnp.zeros_like(L00)
    return jnp.stack([
        jnp.stack([L00, z, z, z], -1),
        jnp.stack([L10, L11, z, z], -1),
        jnp.stack([L20, L21, L22, z], -1),
        jnp.stack([L30, L31, L32, L33], -1),
    ], axis=-2)


def _tril_inv4(L):
    """Inverse of (Q,4,4) lower-triangular matrices, closed form."""
    l = lambda i, j: L[:, i, j]
    K00 = 1.0 / l(0, 0)
    K11 = 1.0 / l(1, 1)
    K22 = 1.0 / l(2, 2)
    K33 = 1.0 / l(3, 3)
    K10 = -l(1, 0) * K00 * K11
    K21 = -l(2, 1) * K11 * K22
    K20 = -(l(2, 0) * K00 + l(2, 1) * K10) * K22
    K32 = -l(3, 2) * K22 * K33
    K31 = -(l(3, 1) * K11 + l(3, 2) * K21) * K33
    K30 = -(l(3, 0) * K00 + l(3, 1) * K10 + l(3, 2) * K20) * K33
    z = jnp.zeros_like(K00)
    return jnp.stack([
        jnp.stack([K00, z, z, z], -1),
        jnp.stack([K10, K11, z, z], -1),
        jnp.stack([K20, K21, K22, z], -1),
        jnp.stack([K30, K31, K32, K33], -1),
    ], axis=-2)


# ----------------------------------------------------------------------------
# Wrapper
# ----------------------------------------------------------------------------

def _vmem_capacity_bytes():
    try:
        return int(pltpu.get_tpu_info().vmem_capacity_bytes)
    except Exception:
        return 64 * 1024 * 1024            # conservative: v7x per-TensorCore VMEM


def _pick_sblk(S, CQ4, itemsize, budget):
    """Largest lane tile (multiple of 128, or the full S) within `budget` bytes."""
    bytes_per_lane = CQ4 * max(itemsize, 4)        # f32 intermediates dominate
    max_lanes = max(128, (budget // bytes_per_lane) // 128 * 128)
    return S if S <= max_lanes else max_lanes


def qbatchnorm2d(x, weight, bias, eps=1e-5):
    """Quaternion covariance batch norm (training-mode forward), NCHW in/out.

    weight: (4, 4, Cq), bias: (4, Cq) — as in the PyTorch module.
    """
    B, C, H, W = x.shape
    assert C % 4 == 0, "quaternion layer needs C % 4 == 0"
    Cq = C // 4
    CQ4 = C                                  # 4 * Cq: collapsed (component, channel)
    S = H * W
    N = B * S
    itemsize = jnp.dtype(x.dtype).itemsize

    # Zero-copy NCHW view: row c*Cq + q holds component c of quaternion channel q.
    x3 = x.reshape(B, CQ4, S)

    cap = _vmem_capacity_bytes()
    S_blk = _pick_sblk(S, CQ4, itemsize, budget=cap // 16)
    n_tiles = pl.cdiv(S, S_blk)
    need_mask = (S % S_blk) != 0
    # Extra "parallel" spatial split so both v7x TensorCores have work at B == 1.
    n_outer = 2 if (B == 1 and n_tiles % 2 == 0) else 1
    n_inner = n_tiles // n_outer
    blk_f32 = CQ4 * S_blk * 4
    vmem_limit = int(min(int(0.75 * cap), max(32 << 20, 10 * blk_f32 + (4 << 20))))

    # ---- pass 1: per-(batch, outer-tile) partial moment sums (MXU) ------------
    stats_kernel = functools.partial(
        _stats_kernel, n_inner=n_inner, s_total=S, s_blk=S_blk, need_mask=need_mask)

    g_part, s_part = pl.pallas_call(
        stats_kernel,
        out_shape=(jax.ShapeDtypeStruct((B, n_outer, CQ4, CQ4), jnp.float32),
                   jax.ShapeDtypeStruct((B, n_outer, CQ4, 1), jnp.float32)),
        grid=(B, n_outer, n_inner),
        in_specs=[pl.BlockSpec((1, CQ4, S_blk),
                               lambda b, so, si: (b, 0, so * n_inner + si))],
        out_specs=(pl.BlockSpec((1, 1, CQ4, CQ4), lambda b, so, si: (b, so, 0, 0)),
                   pl.BlockSpec((1, 1, CQ4, 1), lambda b, so, si: (b, so, 0, 0))),
        compiler_params=pltpu.CompilerParams(
            dimension_semantics=("parallel", "parallel", "arbitrary"),
            vmem_limit_bytes=vmem_limit),
        cost_estimate=pl.CostEstimate(
            flops=2 * B * CQ4 * CQ4 * S, transcendentals=0,
            bytes_accessed=int(x3.size) * itemsize
                           + B * n_outer * CQ4 * (CQ4 + 1) * 4),
    )(x3)

    # ---- tiny per-channel 4x4 math (plain JAX; no wrapper-side matmuls) -------
    # Note: single-pass E[x x^T] - mean mean^T in f32; fine for roughly
    # zero-mean activations (the usual case), see module docstring for caveats.
    g = jnp.sum(g_part, axis=(0, 1))                       # (4Cq, 4Cq)
    s1 = jnp.sum(s_part, axis=(0, 1))[:, 0]                # (4Cq,)
    mean_flat = s1 / N
    meanq = mean_flat.reshape(4, Cq).T                     # (Cq, 4)
    E2 = jnp.transpose(
        jnp.diagonal(g.reshape(4, Cq, 4, Cq), axis1=1, axis2=3), (2, 0, 1)) / N
    cov = E2 - meanq[:, :, None] * meanq[:, None, :]       # (Cq, 4, 4)

    L = _chol4(cov + eps * jnp.eye(4, dtype=jnp.float32)[None])
    K = _tril_inv4(L)                                      # (Cq, 4, 4) = L^{-1}

    Wq = jnp.transpose(weight.astype(jnp.float32), (2, 0, 1))       # (Cq, 4, 4)
    M = jnp.sum(Wq[:, :, :, None] * K[:, None, :, :], axis=2)       # W @ L^{-1}
    beta = bias.astype(jnp.float32).T - jnp.sum(M * meanq[:, None, :], axis=2)

    # Block-diagonal fused whiten+affine:  A[c*Cq+q, d*Cq+q] = M[q, c, d].
    A4 = (jnp.transpose(M, (1, 2, 0))[:, :, :, None]
          * jnp.eye(Cq, dtype=jnp.float32)[None, None])              # (4,4,Cq,Cq)
    A = jnp.transpose(A4, (0, 2, 1, 3)).reshape(CQ4, CQ4).astype(x.dtype)
    beta_arr = beta.T.reshape(CQ4, 1)                                # (4Cq, 1) f32

    # ---- pass 2: fused whiten + affine,  y = A @ x + beta  (MXU) --------------
    y3 = pl.pallas_call(
        _apply_kernel,
        out_shape=jax.ShapeDtypeStruct((B, CQ4, S), x.dtype),
        grid=(B, n_tiles),
        in_specs=[pl.BlockSpec((1, CQ4, S_blk), lambda b, t: (b, 0, t)),
                  pl.BlockSpec((CQ4, CQ4), lambda b, t: (0, 0)),
                  pl.BlockSpec((CQ4, 1), lambda b, t: (0, 0))],
        out_specs=pl.BlockSpec((1, CQ4, S_blk), lambda b, t: (b, 0, t)),
        compiler_params=pltpu.CompilerParams(
            dimension_semantics=("parallel", "parallel"),
            vmem_limit_bytes=vmem_limit),
        cost_estimate=pl.CostEstimate(
            flops=2 * B * CQ4 * CQ4 * S, transcendentals=0,
            bytes_accessed=2 * int(x3.size) * itemsize),
    )(x3, A, beta_arr)

    return y3.reshape(B, C, H, W)


# ----------------------------------------------------------------------------
# Numpy reference mirroring the PyTorch module (training-mode forward)
# ----------------------------------------------------------------------------

def qbatchnorm2d_ref(x, weight, bias, eps=1e-5):
    xn = np.asarray(x, np.float64)
    wn = np.asarray(weight, np.float64)        # (4,4,Cq)
    bn = np.asarray(bias, np.float64)          # (4,Cq)
    B, C, H, W = xn.shape
    Cq = C // 4
    xq = xn.reshape(B, 4, Cq, H, W).transpose(1, 0, 2, 3, 4)    # (4,B,Cq,H,W)
    mean = xq.mean(axis=(1, 3, 4))                              # (4,Cq)
    xc = xq - mean[:, None, :, None, None]
    perm = xc.transpose(2, 0, 1, 3, 4).reshape(Cq, 4, -1)       # (Cq,4,N)
    cov = perm @ perm.transpose(0, 2, 1) / perm.shape[-1]       # (Cq,4,4)
    L = np.linalg.cholesky(cov + eps * np.eye(4)[None])
    z = np.linalg.solve(L, perm)                                # L^{-1} xc
    Wq = wn.transpose(2, 0, 1)                                  # (Cq,4,4)
    y = np.einsum('qij,qjn->qin', Wq, z) + bn.T[:, :, None]     # (Cq,4,N)
    y = y.reshape(Cq, 4, B, H, W).transpose(2, 1, 0, 3, 4).reshape(B, C, H, W)
    return y


if __name__ == "__main__":
    kx, kw, kb = jax.random.split(jax.random.PRNGKey(0), 3)
    B, C, H, W = 2, 8, 16, 16          # Cq = 2 quaternion channels
    Cq = C // 4
    x = jax.random.normal(kx, (B, C, H, W), dtype=jnp.float32)

    # module init: weight = diag(0.5,1,1,1) per channel, bias = 0; perturb a bit
    # so the full affine path is exercised (any values are valid parameters).
    weight = jnp.zeros((4, 4, Cq), jnp.float32)
    weight = (weight.at[0, 0].set(0.5).at[1, 1].set(1.0)
                    .at[2, 2].set(1.0).at[3, 3].set(1.0))
    weight = weight + 0.05 * jax.random.normal(kw, (4, 4, Cq), jnp.float32)
    bias = 0.1 * jax.random.normal(kb, (4, Cq), jnp.float32)

    out = jax.block_until_ready(qbatchnorm2d(x, weight, bias, eps=1e-5))
    assert out.shape == (B, C, H, W), out.shape

    ref = qbatchnorm2d_ref(x, weight, bias, eps=1e-5)
    # f32 accumulation on the MXU vs float64 numpy reference.
    np.testing.assert_allclose(np.asarray(out), ref, rtol=1e-3, atol=1e-3)

    print("KERNEL_OK")
</pallas_src>

<mosaic_0001>
module attributes {stable_mosaic.version = 11 : i64} {
  func.func @_stats_kernel(%arg0: i32, %arg1: i32, %arg2: i32, %arg3: memref<1x8x256xf32, #tpu.memory_space<vmem>>, %arg4: memref<1x1x8x8xf32, #tpu.memory_space<vmem>>, %arg5: memref<1x1x8x1xf32, #tpu.memory_space<vmem>>) attributes {dimension_semantics = [#tpu.dimension_semantics<parallel>, #tpu.dimension_semantics<parallel>, #tpu.dimension_semantics<arbitrary>], iteration_bounds = array<i64: 2, 1, 1>, scalar_prefetch = 0 : i64, scratch_operands = 0 : i64, tpu.core_type = #tpu.core_type<tc>, window_params = [{transform_indices = @transform_0, window_bounds = array<i64: 1, 8, 256>}, {transform_indices = @transform_1, window_bounds = array<i64: 1, 1, 8, 8>}, {transform_indices = @transform_2, window_bounds = array<i64: 1, 1, 8, 1>}]} {
    %c0_i32 = arith.constant 0 : i32
    %0 = arith.cmpi eq, %arg2, %c0_i32 : i32
    %1 = arith.extui %0 : i1 to i32
    %c0_i32_0 = arith.constant 0 : i32
    %2 = arith.cmpi ne, %1, %c0_i32_0 : i32
    scf.if %2 {
      %cst_20 = arith.constant 0.000000e+00 : f32
      %20 = vector.broadcast %cst_20 : f32 to vector<1x1x8x8xf32>
      %c0_21 = arith.constant 0 : index
      %c0_22 = arith.constant 0 : index
      %c0_23 = arith.constant 0 : index
      %c0_24 = arith.constant 0 : index
      %21 = vector.load %arg4[%c0_21, %c0_22, %c0_23, %c0_24] : memref<1x1x8x8xf32, #tpu.memory_space<vmem>>, vector<1x1x8x8xf32>
      tpu.vector_store %arg4[%c0_21, %c0_22, %c0_23, %c0_24], %20 {strides = array<i32>} : memref<1x1x8x8xf32, #tpu.memory_space<vmem>>, vector<1x1x8x8xf32>,
      %cst_25 = arith.constant 0.000000e+00 : f32
      %22 = vector.broadcast %cst_25 : f32 to vector<1x1x8x1xf32>
      %c0_26 = arith.constant 0 : index
      %c0_27 = arith.constant 0 : index
      %c0_28 = arith.constant 0 : index
      %c0_29 = arith.constant 0 : index
      %23 = vector.load %arg5[%c0_26, %c0_27, %c0_28, %c0_29] : memref<1x1x8x1xf32, #tpu.memory_space<vmem>>, vector<1x1x8x1xf32>
      tpu.vector_store %arg5[%c0_26, %c0_27, %c0_28, %c0_29], %22 {strides = array<i32>} : memref<1x1x8x1xf32, #tpu.memory_space<vmem>>, vector<1x1x8x1xf32>,
    } else {
    }
    %c0 = arith.constant 0 : index
    %c0_1 = arith.constant 0 : index
    %c0_2 = arith.constant 0 : index
    %3 = vector.load %arg3[%c0, %c0_1, %c0_2] : memref<1x8x256xf32, #tpu.memory_space<vmem>>, vector<1x8x256xf32>
    %4 = vector.shape_cast %3 : vector<1x8x256xf32> to vector<8x256xf32>
    %c0_3 = arith.constant 0 : index
    %c0_4 = arith.constant 0 : index
    %c0_5 = arith.constant 0 : index
    %c0_6 = arith.constant 0 : index
    %5 = vector.load %arg4[%c0_3, %c0_4, %c0_5, %c0_6] : memref<1x1x8x8xf32, #tpu.memory_space<vmem>>, vector<1x1x8x8xf32>
    %6 = vector.shape_cast %5 : vector<1x1x8x8xf32> to vector<8x8xf32>
    %cst = arith.constant dense<0.000000e+00> : vector<8x8xf32>
    %7 = tpu.matmul %4, %4, %cst {dimension_numbers = #tpu.dot_dimension_numbers<[1], [1], [0], [0], [0, 0, 1, 0], [], []>} : vector<8x256xf32>, vector<8x256xf32>, vector<8x8xf32> -> vector<8x8xf32>
    %8 = arith.addf %6, %7 : vector<8x8xf32>
    %c0_7 = arith.constant 0 : index
    %c0_8 = arith.constant 0 : index
    %c0_9 = arith.constant 0 : index
    %c0_10 = arith.constant 0 : index
    %9 = vector.load %arg4[%c0_7, %c0_8, %c0_9, %c0_10] : memref<1x1x8x8xf32, #tpu.memory_space<vmem>>, vector<1x1x8x8xf32>
    %10 = vector.shape_cast %9 : vector<1x1x8x8xf32> to vector<8x8xf32>
    %11 = vector.shape_cast %8 : vector<8x8xf32> to vector<1x1x8x8xf32>
    tpu.vector_store %arg4[%c0_7, %c0_8, %c0_9, %c0_10], %11 {strides = array<i32>} : memref<1x1x8x8xf32, #tpu.memory_space<vmem>>, vector<1x1x8x8xf32>,
    %c0_11 = arith.constant 0 : index
    %c0_12 = arith.constant 0 : index
    %c0_13 = arith.constant 0 : index
    %c0_14 = arith.constant 0 : index
    %12 = vector.load %arg5[%c0_11, %c0_12, %c0_13, %c0_14] : memref<1x1x8x1xf32, #tpu.memory_space<vmem>>, vector<1x1x8x1xf32>
    %13 = vector.shape_cast %12 : vector<1x1x8x1xf32> to vector<8x1xf32>
    %cst_15 = arith.constant dense<0.000000e+00> : vector<8xf32>
    %14 = vector.multi_reduction <add>, %4, %cst_15 [1] : vector<8x256xf32> to vector<8xf32>
    %15 = vector.shape_cast %14 : vector<8xf32> to vector<8x1xf32>
    %16 = arith.addf %13, %15 : vector<8x1xf32>
    %c0_16 = arith.constant 0 : index
    %c0_17 = arith.constant 0 : index
    %c0_18 = arith.constant 0 : index
    %c0_19 = arith.constant 0 : index
    %17 = vector.load %arg5[%c0_16, %c0_17, %c0_18, %c0_19] : memref<1x1x8x1xf32, #tpu.memory_space<vmem>>, vector<1x1x8x1xf32>
    %18 = vector.shape_cast %17 : vector<1x1x8x1xf32> to vector<8x1xf32>
    %19 = vector.shape_cast %16 : vector<8x1xf32> to vector<1x1x8x1xf32>
    tpu.vector_store %arg5[%c0_16, %c0_17, %c0_18, %c0_19], %19 {strides = array<i32>} : memref<1x1x8x1xf32, #tpu.memory_space<vmem>>, vector<1x1x8x1xf32>,
    return
  }
  func.func @transform_0(%arg0: i32, %arg1: i32, %arg2: i32) -> (i32, i32, i32) {
    %c1_i32 = arith.constant 1 : i32
    %0 = arith.muli %arg1, %c1_i32 : i32
    %1 = arith.addi %0, %arg2 : i32
    %c0_i32 = arith.constant 0 : i32
    %c0_i32_0 = arith.constant 0 : i32
    return %arg0, %c0_i32, %1 : i32, i32, i32
  }
  func.func @transform_1(%arg0: i32, %arg1: i32, %arg2: i32) -> (i32, i32, i32, i32) {
    %c0_i32 = arith.constant 0 : i32
    %c0_i32_0 = arith.constant 0 : i32
    %c0_i32_1 = arith.constant 0 : i32
    return %arg0, %arg1, %c0_i32, %c0_i32_0 : i32, i32, i32, i32
  }
  func.func @transform_2(%arg0: i32, %arg1: i32, %arg2: i32) -> (i32, i32, i32, i32) {
    %c0_i32 = arith.constant 0 : i32
    %c0_i32_0 = arith.constant 0 : i32
    %c0_i32_1 = arith.constant 0 : i32
    return %arg0, %arg1, %c0_i32, %c0_i32_0 : i32, i32, i32, i32
  }
}

</mosaic_0001>

<bundles_post_ra>
// kernel: tpu_custom_call.1
= control target key start
LH: loop header
LB: loop body
LE: loop exit
PB: predicated region body
PF: predicated region fallthrough
CT: control target
= control target key end

     0   :  { %8 = vsyncpa [#allocation3], 0  ;;  %s753_s0 = inlined_call_operand.hbm [shape: f32[2,8,256], index: 0, kind: input, shape index: {}]   ;;  %s754_s1 = inlined_call_operand.hbm [shape: f32[2,1,8,8], index: 1, kind: output, shape index: {0}]   ;;  %s755_s2 = inlined_call_operand.vmem [shape: f32[2,1,8,1], index: 2, kind: output, shape index: {1}]  }
   0x1   :  { %10 = vsyncpa [#allocation3 + $0x1], 0 }
   0x2   :  { %11 = vsyncpa [#allocation4], 0 }
   0x3   :  { %13 = vsyncpa [#allocation4 + $0x1], 0  ;;  %s625_s9 = smov 0   ;;  %s627_s10 = smov 0  }
   0x4   :  { %s629_s11 = smov 0   ;;  %s631_s12 = smov 0  }
   0x5   :  { %s633_s13 = smov 0   ;;  %s635_s14 = smov 0  }
   0x6 LB: > { %s416_s15 = sadd.s32 4294967295, %s607_s14   ;;  %s417_s16 = sadd.s32 4294967294, %s607_s14   ;;  %s607_s14 = sphi %s635_s14, %s19_s14   ;;  %s603_s13 = sphi %s633_s13, %s764_s13   ;;  %s599_s12 = sphi %s631_s12, %s763_s12   ;;  %s595_s11 = sphi %s629_s11, %s762_s11   ;;  %s591_s10 = sphi %s627_s10, %s761_s10   ;;  %s587_s9 = sphi %s625_s9, %s760_s9  }
   0x7   : > { %s38_s17 = sadd.s32 1, %s603_s13  ;;  %s49_s18 = sadd.s32 1, %s595_s11 }
   0x8   : > { %p40_p0 = scmp.ge.s32.totalorder %s38_s17, 2  ;;  %p56_p1 = scmp.ne.s32.totalorder %s595_s11, %s591_s10 }
   0x9   : > { %p57_p2 = scmp.eq.s32.totalorder %s607_s14, 0  ;;  %p62_p3 = scmp.ne.s32.totalorder %s591_s10, %s587_s9 }
   0xa   : > { %s766_s17 = smov (%p40_p0, %s38_s17), 0  ;;  %p63_p5 = scmp.eq.s32.totalorder %s416_s15, 0 }
   0xb   : > { %p666_p4 = por %p57_p2, %p56_p1  ;;  %s44_s20 = ssub.s32 %s603_s13, %s766_s17 }
   0xc   : > { %p88_p6 = scmp.eq.s32.totalorder %s416_s15, 1  ;;  %p47_p7 = scmp.eq.s32.totalorder %s44_s20, 0 }
   0xd   : > { %p672_p8 = por %p63_p5, %p62_p3  ;;  %p94_p10 = scmp.eq.s32.totalorder %s417_s16, 1 }
   0xe   : > { %p676_p9 = por %p88_p6, %p56_p1  ;;  %p419_p12 = scmp.ge.s32.totalorder %s607_s14, 2 }
   0xf   : > { %s681_s23 = scalar_select %p47_p7, %s595_s11, %s49_s18  }
  0x10   : > { %p683_p11 = por %p94_p10, %p62_p3  ;;  %p444_p13 = scmp.lt.s32.totalorder %s607_s14, 2 }
  0x11   : > { %s142_s25 = sand.u32 1, %s595_s11   ;;  %s431_s27 = sshll.u32 %s603_s13, 4 }
  0x12   : > { %s420_s26 = sshll.u32 %s142_s25, 4  ;;  %s154_s30 = scalar_lea.hbm %s753_s0, %s431_s27 }
  0x13   : > { %s146_s3 = scalar_lea.vmem [#allocation2], %s420_s26  ;;  %s156_s5 = sshll.u32 %s154_s30, 4  ;;  %s157_s5 = int_to_ptr.hbm [resolvable:$true] %s156_s5 }
  0x14   : > { %s158_s4 = sshll.u32 %s146_s3, 4  ;;  %p437_p0 = pnand %p444_p13, %p666_p4  ;;  %s159_s4 = int_to_ptr.vmem [resolvable:$true] %s158_s4 }
  0x15   : > { %p423_p1 = scmp.ge.s32.totalorder %s607_s14, 1  ;;  %p163_p2 = scmp.lt.s32.totalorder %s607_s14, 3 }
  0x16   : > { %s143_s6 = scalar_lea.sflag [#allocation3], %s142_s25 }
  0x17   : > { %439 = dma.hbm_to_vmem [thread:$0]  (!%p437_p0), %s157_s5, 256, %s159_s4, %s143_s6  }
  0x18   : > { %p164_p3 = pnand %p423_p1, %p163_p2 }
  0x19   : > { %s699_s7 = sand.u32 (!%p164_p3), 1, %s591_s10  }
  0x1a   : > { %167 = sbr.rel (%p164_p3) target bundleno = 169 (0xa9), region = 24  ;;  %s424_s8 = sshll.u32 (!%p164_p3), %s699_s7, 4 }
  0x1b   : > { %s170_s15 = scalar_lea.sflag (!%p164_p3), [#allocation3], %s699_s7  ;;  %s173_s16 = scalar_lea.vmem (!%p164_p3), [#allocation2], %s424_s8 }
  0x1f   : > { %578 = dma.done.wait (%p672_p8), %s170_s15, 256  }
  0x20   : > { %580 = vsyncadd (%p672_p8), %s170_s15, 4294967040  ;;  %v219_v0 = vld [vmem:[%s173_s16] sm:$0xff]  ;;  %v220_v1 = vld [vmem:[%s173_s16 + $0x8] sm:$0xff]  ;;  %p204_p4 = scmp.lt.s32.totalorder %s599_s12, 1  ;;  %s425_s19 = sshll.u32 %s699_s7, 3  ;;  %vm215_vm0 = vcmask 64512  }
  0x21   : > { %237 = vmatpush.xpose.msra.mxu0 %v219_v0  ;;  %257 = vmatpush.xpose.msra.mxu1 %v220_v1  ;;  %v266_v2 = vadd.f32 %v220_v1, %v219_v0  ;;  %s192_s27 = scalar_lea.vmem [#allocation5], %s425_s19  ;;  %v609_v3 = vmov 0.0   ;;  %vm217_vm1 = vcmask 7168   ;;  %s428_s28 = sshll.u32 %s599_s12, 3 }
  0x22   : > { %s205_s18 = scalar_select %p204_p4, %s599_s12, 1  ;;  %216 = vst.msk [vmem:[%s192_s27] sm:$0xff] %vm215_vm0, %v609_v3 }
  0x23   : > { %267 = vadd.xlane.f32.xlu0 %v266_v2  ;;  %s291_s3 = scalar_lea.hbm %s754_s1, %s428_s28  ;;  %s293_s4 = sshll.u32 %s192_s27, 4  ;;  %s294_s4 = int_to_ptr.vmem [resolvable:$true] %s293_s4 }
  0x24   : > { %238 = vmatmul.f32.vlgmr.msra.gmra.mxu0 %v219_v0  ;;  %258 = vmatmul.f32.vlgmr.msra.gmra.mxu1 %v220_v1  ;;  %s426_s20 = sshll.u32 %s205_s18, 3  ;;  %s295_s5 = sshll.u32 %s291_s3, 4  ;;  %s296_s5 = int_to_ptr.hbm [resolvable:$true] %s295_s5 }
  0x25   : > { %s210_s21 = scalar_lea.vmem %s755_s2, %s426_s20  ;;  %s273_s6 = scalar_lea.sflag [#allocation4], %s699_s7 }
  0x26   : > { %218 = vst.msk [vmem:[%s210_s21] sm:$0xff] %vm217_vm1, %v609_v3  ;;  %s539_s8 = sshra.s32 %s296_s5, 4  ;;  %s545_s18 = scalar_lea.hbm %s754_s1, 16  ;;  %s540_s8 = int_to_ptr.hbm [resolvable:$true] %s539_s8 }
  0x27   : > { %s541_s12 = scalar_lea.hbm %s540_s8, 8  ;;  %p546_p8 = scmp.lt.s32.totalorder %s540_s8, %s754_s1 }
  0x28   : > { %p542_p5 = scmp.ne.s32.totalorder %s540_s8, %s541_s12  ;;  %p547_p10 = scmp.lt.s32.totalorder %s545_s18, %s541_s12 }
  0x29   : > { %v221_v8 = vld [vmem:[%s192_s27] sm:$0xff] }
  0x2a   : > { %p543_p6 = pnand %p542_p5, %p676_p9  ;;  %p548_p13 = por %p547_p10, %p546_p8 }
  0x2c   : > { %p544_p7 = pneg %p543_p6 }
  0x2d   : > { %v265_v4 = vld [vmem:[%s210_s21] sm:$0xff] }
  0x2e   : > { %p549_p0 = pnand %p548_p13, %p544_p7 }
  0x96   : > { %v268_v5 = vpop.xlane.xlu0 %267 }
  0x97   : > { %v269_v6 = vadd.f32 %v268_v5, %v265_v4 }
  0x99   : > { %271 = vst.msk [vmem:[%s210_s21] sm:$0xff] %vm217_vm1, %v269_v6 }
  0xa1   : > { %v239_v7 = vpop.f32.mrf.mxu0  ;;  %v259_v9 = vpop.f32.mrf.mxu1 }
  0xa2   : > { %v260_v10 = vadd.f32 %v259_v9, %v239_v7 }
  0xa4   : > { %v262_v11 = vadd.f32 %v260_v10, %v221_v8 }
  0xa6   : > { %264 = vst.msk [vmem:[%s192_s27] sm:$0xff] %vm215_vm0, %v262_v11 }
  0xa7   : > { %552 = shalt.err (!%p549_p0)
}
  0xa8   : > { %434 = dma.vmem_to_hbm [thread:$0]  (%p676_p9), %s294_s4, 128, %s296_s5, %s273_s6  }
  0xa9 PF: > { %s310_s7 = sand.u32 1, %s587_s9   ;;  %p441_p1 = pnand %p419_p12, %p683_p11 }
  0xaa   : > { %s311_s25 = scalar_lea.sflag [#allocation4], %s310_s7 }
  0xab   : > { %p442_p2 = pneg %p441_p1 }
  0xad   : > { %582 = dma.done.wait (%p442_p2), %s311_s25, 128  }
  0xae   : > { %584 = vsyncadd (%p442_p2), %s311_s25, 4294967168  ;;  %s19_s14 = sadd.s32 1, %s607_s14   ;;  %s760_s9 = smov %s591_s10 }
  0xaf   : > { %p16_p3 = scmp.ge.s32.totalorder %s19_s14, 4   ;;  %s761_s10 = smov %s595_s11 }
  0xb0   : > { %s762_s11 = smov %s681_s23  ;;  %s763_s12 = smov %s603_s13 }
  0xb1   : > { %s764_s13 = smov %s766_s17  ;;  %18 = sbr.rel (!%p16_p3) target bundleno = 6 (0x6), region = 85 }
  0xb6   :  { %327 = vsyncpa [#allocation3], 1 }
  0xb7   :  { %329 = vsyncpa [#allocation3 + $0x1], 1 }
  0xb8   :  { %330 = vsyncpa [#allocation4], 1 }
  0xb9   :  { %332 = vsyncpa [#allocation4 + $0x1], 1 }

</bundles_post_ra>
